<compile_context>
chip_gen: v7x
topology: tpu7x:2x2x1
jax: 0.10.0
libtpu: 0.0.40
codegen_flags: <defaults>
</compile_context>

<pallas_src>
import jax
import jax.numpy as jnp
from jax.experimental import pallas as pl
from jax.experimental.pallas import tpu as pltpu


def _round_up(x, m):
    return ((x + m - 1) // m) * m


def spam_classifier_kernel(x_ref, w1_ref, b1_ref, w2_ref, b2_ref, w3_ref, b3_ref,
                           o_ref):
    # layer 1: cast the streamed x tile to bf16 on-chip (vreg-level, free vs. HBM);
    # single MXU pass with f32 accumulation; bias + ReLU on the VPU in f32.
    x = x_ref[...].astype(jnp.bfloat16)                       # (TB, D)
    h1 = jnp.dot(x, w1_ref[...], preferred_element_type=jnp.float32)
    h1 = jnp.maximum(h1 + b1_ref[...], 0.0)                   # dropout = identity (eval)

    # layer 2: explicit bf16 operands -> single MXU pass (matters on v5e); f32 acc.
    h2 = jnp.dot(h1.astype(jnp.bfloat16), w2_ref[...].astype(jnp.bfloat16),
                 preferred_element_type=jnp.float32)
    h2 = jnp.maximum(h2 + b2_ref[...], 0.0)

    # layer 3 (32 -> 1) on the VPU/XLU: a (TB,32)@(32,1) matmul would use <1% of the
    # MXU columns; broadcast-multiply + lane reduction is cheaper and frees the MXU.
    h3 = jnp.sum(h2 * w3_ref[...], axis=-1, keepdims=True) + b3_ref[...]
    o_ref[...] = jax.nn.sigmoid(h3)                           # (TB, 1) f32


def _vmem_capacity_bytes():
    try:
        return int(pltpu.get_tpu_info().vmem_capacity_bytes)
    except Exception:
        return 64 << 20                      # conservative fallback = v7x per-TC VMEM


def _plan_tiles(batch, input_dim):
    """Pick the batch tile from the chip's VMEM capacity (generation-aware),
    accounting for resident weights/biases, double buffering and lane padding."""
    cap = _vmem_capacity_bytes()
    vmem_limit = (cap * 3) // 4              # ~48 MiB on v7x, ~96 MiB on v5e/v6e
    d_lanes = _round_up(max(input_dim, 1), 128)
    d_sub = _round_up(max(input_dim, 1), 8)

    # Resident (constant-index-map) buffers: double-buffered by the pipeline,
    # padded to (8, 128) layout tiles.
    resident = (2 * 2 * d_sub * 128          # W1 (D,64) bf16, lanes padded 64->128
                + 2 * 4 * 64 * 128           # W2 (64,32) f32
                + 2 * 4 * 4 * 8 * 128)       # W3, b1, b2, b3 (each <= one f32 (8,128) tile)

    # Per-row streamed / intermediate bytes (lane-padded to 128).
    per_row = (2 * 4 * d_lanes               # x tile, f32, double-buffered
               + 2 * d_lanes                 # in-kernel bf16 copy of the x tile
               + 2 * 4 * 128                 # (tb,1) output block, lane-padded, double-buffered
               + 2 * 4 * 128                 # h1 / h2 f32 intermediates
               + 2 * 128)                    # bf16 h1 copy

    budget = max(vmem_limit - resident - (4 << 20), 1 << 20)   # 4 MiB compiler slack
    tb = max(budget // per_row, 16)

    # v7x megacore: guarantee >=2 (evenly split) grid steps when the batch is worth
    # splitting, so "parallel" dimension semantics give both TensorCores work.
    if batch >= 256:
        tb = min(tb, _round_up(-(-batch // 2), 128))

    if tb >= 128:
        tb = (tb // 128) * 128               # lane/sublane friendly large tiles
    else:
        tb = _round_up(tb, 16)               # bf16 packs 16 rows per sublane group
    tb = int(min(tb, _round_up(batch, 8)))   # never vastly exceed the batch
    grid_steps = pl.cdiv(batch, tb)
    return tb, grid_steps, int(vmem_limit)


def spam_classifier_forward(x, params):
    """x: (B, input_dim), any float dtype (streamed as-is; cast to bf16 on-chip).
    params: dict of w1,b1,w2,b2,w3,b3 with weights stored as (in_features, out_features),
    i.e. the TRANSPOSE of a raw PyTorch nn.Linear state_dict.
    Returns sigmoid(MLP(x)) of shape (B, 1), float32 (eval-mode dropout)."""
    B, D = x.shape
    assert params["w1"].shape == (D, 64), "w1 must be (input_dim, 64) — transpose nn.Linear weights"
    assert params["w2"].shape == (64, 32), "w2 must be (64, 32) — transpose nn.Linear weights"
    assert params["w3"].shape in ((32, 1), (1, 32)), "w3 must hold 32 weights"

    w1 = params["w1"].astype(jnp.bfloat16)                    # (D, 64) resident in bf16
    b1 = params["b1"].astype(jnp.float32).reshape(1, 64)
    w2 = params["w2"].astype(jnp.float32)                     # (64, 32)
    b2 = params["b2"].astype(jnp.float32).reshape(1, 32)
    w3 = params["w3"].astype(jnp.float32).reshape(1, 32)      # row vector for the VPU path
    b3 = params["b3"].astype(jnp.float32).reshape(1, 1)

    tb, grid_steps, vmem_limit = _plan_tiles(B, D)
    resident = lambda a: pl.BlockSpec(a.shape, lambda i: (0,) * a.ndim)

    out = pl.pallas_call(
        spam_classifier_kernel,
        out_shape=jax.ShapeDtypeStruct((B, 1), jnp.float32),
        grid=(grid_steps,),
        in_specs=[
            pl.BlockSpec((tb, D), lambda i: (i, 0)),          # x: batch-tiled, double-buffered
            resident(w1), resident(b1),
            resident(w2), resident(b2),
            resident(w3), resident(b3),
        ],
        out_specs=pl.BlockSpec((tb, 1), lambda i: (i, 0)),
        compiler_params=pltpu.CompilerParams(
            dimension_semantics=("parallel",),                # shard batch tiles across v7x's 2 TCs
            vmem_limit_bytes=vmem_limit,                      # generation-aware scoped limit
        ),
    )(x, w1, b1, w2, b2, w3, b3)

    return out


def init_params(input_dim, key):
    """Deterministic synthetic init matching nn.Linear shapes (stored transposed)."""
    k = jax.random.split(key, 6)

    def linear(kw, kb, fan_in, fan_out):
        # PyTorch default: U(-1/sqrt(fan_in), 1/sqrt(fan_in))
        bound = 1.0 / jnp.sqrt(jnp.float32(fan_in))
        w = jax.random.uniform(kw, (fan_in, fan_out), jnp.float32, -bound, bound)
        b = jax.random.uniform(kb, (1, fan_out), jnp.float32, -bound, bound)
        return w, b

    w1, b1 = linear(k[0], k[1], input_dim, 64)
    w2, b2 = linear(k[2], k[3], 64, 32)
    w3, b3 = linear(k[4], k[5], 32, 1)
    return {"w1": w1, "b1": b1, "w2": w2, "b2": b2, "w3": w3, "b3": b3}


def _reference_forward(x, params):
    """Pure-JAX f32 reference for a correctness check."""
    h1 = jnp.maximum(x @ params["w1"] + params["b1"], 0.0)
    h2 = jnp.maximum(h1 @ params["w2"] + params["b2"], 0.0)
    return jax.nn.sigmoid(h2 @ params["w3"] + params["b3"])


if __name__ == "__main__":
    key = jax.random.PRNGKey(0)
    k_x, k_p = jax.random.split(key)

    batch = 8
    input_dim = 32  # e.g. TF-IDF / feature vector dimension

    x = jax.random.normal(k_x, (batch, input_dim), dtype=jnp.float32)
    params = init_params(input_dim, k_p)

    out = jax.block_until_ready(spam_classifier_forward(x, params))

    assert out.shape == (batch, 1)
    assert out.dtype == jnp.float32
    assert bool(jnp.all((out >= 0.0) & (out <= 1.0)))

    # Only in-kernel bf16 casts at the two dots remain (x is streamed in f32 now).
    ref = _reference_forward(x, params)
    assert bool(jnp.max(jnp.abs(out - ref)) < 2e-2)

    print("KERNEL_OK")
</pallas_src>

<mosaic_0001>
module attributes {stable_mosaic.version = 11 : i64} {
  func.func @spam_classifier_kernel(%arg0: i32, %arg1: memref<8x32xf32, #tpu.memory_space<vmem>>, %arg2: memref<32x64xbf16, #tpu.memory_space<vmem>>, %arg3: memref<1x64xf32, #tpu.memory_space<vmem>>, %arg4: memref<64x32xf32, #tpu.memory_space<vmem>>, %arg5: memref<1x32xf32, #tpu.memory_space<vmem>>, %arg6: memref<1x32xf32, #tpu.memory_space<vmem>>, %arg7: memref<1x1xf32, #tpu.memory_space<vmem>>, %arg8: memref<8x1xf32, #tpu.memory_space<vmem>>) attributes {dimension_semantics = [#tpu.dimension_semantics<parallel>], iteration_bounds = array<i64: 1>, scalar_prefetch = 0 : i64, scratch_operands = 0 : i64, tpu.core_type = #tpu.core_type<tc>, window_params = [{transform_indices = @transform_0, window_bounds = array<i64: 8, 32>}, {pipeline_mode = #tpu.pipeline_mode<synchronous>, transform_indices = @transform_1, window_bounds = array<i64: 32, 64>}, {pipeline_mode = #tpu.pipeline_mode<synchronous>, transform_indices = @transform_2, window_bounds = array<i64: 1, 64>}, {pipeline_mode = #tpu.pipeline_mode<synchronous>, transform_indices = @transform_3, window_bounds = array<i64: 64, 32>}, {pipeline_mode = #tpu.pipeline_mode<synchronous>, transform_indices = @transform_4, window_bounds = array<i64: 1, 32>}, {pipeline_mode = #tpu.pipeline_mode<synchronous>, transform_indices = @transform_5, window_bounds = array<i64: 1, 32>}, {pipeline_mode = #tpu.pipeline_mode<synchronous>, transform_indices = @transform_6, window_bounds = array<i64: 1, 1>}, {transform_indices = @transform_7, window_bounds = array<i64: 8, 1>}]} {
    %c0 = arith.constant 0 : index
    %c0_0 = arith.constant 0 : index
    %0 = vector.load %arg1[%c0, %c0_0] : memref<8x32xf32, #tpu.memory_space<vmem>>, vector<8x32xf32>
    %1 = arith.truncf %0 : vector<8x32xf32> to vector<8x32xbf16>
    %c0_1 = arith.constant 0 : index
    %c0_2 = arith.constant 0 : index
    %2 = vector.load %arg2[%c0_1, %c0_2] : memref<32x64xbf16, #tpu.memory_space<vmem>>, vector<32x64xbf16>
    %cst = arith.constant dense<0.000000e+00> : vector<8x64xf32>
    %3 = tpu.matmul %1, %2, %cst {dimension_numbers = #tpu.dot_dimension_numbers<[1], [0], [0], [1], [0, 0, 1, 1], [], []>} : vector<8x32xbf16>, vector<32x64xbf16>, vector<8x64xf32> -> vector<8x64xf32>
    %c0_3 = arith.constant 0 : index
    %c0_4 = arith.constant 0 : index
    %4 = vector.load %arg3[%c0_3, %c0_4] : memref<1x64xf32, #tpu.memory_space<vmem>>, vector<1x64xf32>
    %5 = vector.broadcast %4 : vector<1x64xf32> to vector<8x64xf32>
    %6 = arith.addf %3, %5 : vector<8x64xf32>
    %cst_5 = arith.constant 0.000000e+00 : f32
    %7 = vector.broadcast %cst_5 : f32 to vector<8x64xf32>
    %8 = arith.maximumf %6, %7 : vector<8x64xf32>
    %9 = arith.truncf %8 : vector<8x64xf32> to vector<8x64xbf16>
    %c0_6 = arith.constant 0 : index
    %c0_7 = arith.constant 0 : index
    %10 = vector.load %arg4[%c0_6, %c0_7] : memref<64x32xf32, #tpu.memory_space<vmem>>, vector<64x32xf32>
    %11 = arith.truncf %10 : vector<64x32xf32> to vector<64x32xbf16>
    %cst_8 = arith.constant dense<0.000000e+00> : vector<8x32xf32>
    %12 = tpu.matmul %9, %11, %cst_8 {dimension_numbers = #tpu.dot_dimension_numbers<[1], [0], [0], [1], [0, 0, 1, 1], [], []>} : vector<8x64xbf16>, vector<64x32xbf16>, vector<8x32xf32> -> vector<8x32xf32>
    %c0_9 = arith.constant 0 : index
    %c0_10 = arith.constant 0 : index
    %13 = vector.load %arg5[%c0_9, %c0_10] : memref<1x32xf32, #tpu.memory_space<vmem>>, vector<1x32xf32>
    %14 = vector.broadcast %13 : vector<1x32xf32> to vector<8x32xf32>
    %15 = arith.addf %12, %14 : vector<8x32xf32>
    %cst_11 = arith.constant 0.000000e+00 : f32
    %16 = vector.broadcast %cst_11 : f32 to vector<8x32xf32>
    %17 = arith.maximumf %15, %16 : vector<8x32xf32>
    %c0_12 = arith.constant 0 : index
    %c0_13 = arith.constant 0 : index
    %18 = vector.load %arg6[%c0_12, %c0_13] : memref<1x32xf32, #tpu.memory_space<vmem>>, vector<1x32xf32>
    %19 = vector.broadcast %18 : vector<1x32xf32> to vector<8x32xf32>
    %20 = arith.mulf %17, %19 : vector<8x32xf32>
    %cst_14 = arith.constant dense<0.000000e+00> : vector<8xf32>
    %21 = vector.multi_reduction <add>, %20, %cst_14 [1] : vector<8x32xf32> to vector<8xf32>
    %22 = vector.shape_cast %21 : vector<8xf32> to vector<8x1xf32>
    %c0_15 = arith.constant 0 : index
    %c0_16 = arith.constant 0 : index
    %23 = vector.load %arg7[%c0_15, %c0_16] : memref<1x1xf32, #tpu.memory_space<vmem>>, vector<1x1xf32>
    %24 = vector.broadcast %23 : vector<1x1xf32> to vector<8x1xf32>
    %25 = arith.addf %22, %24 : vector<8x1xf32>
    %26 = arith.negf %25 : vector<8x1xf32>
    %27 = math.exp %26 : vector<8x1xf32>
    %cst_17 = arith.constant 1.000000e+00 : f32
    %28 = vector.broadcast %cst_17 : f32 to vector<8x1xf32>
    %29 = arith.addf %28, %27 : vector<8x1xf32>
    %30 = arith.divf %28, %29 : vector<8x1xf32>
    %c0_18 = arith.constant 0 : index
    %c0_19 = arith.constant 0 : index
    %31 = vector.load %arg8[%c0_18, %c0_19] : memref<8x1xf32, #tpu.memory_space<vmem>>, vector<8x1xf32>
    tpu.vector_store %arg8[%c0_18, %c0_19], %30 {strides = array<i32>} : memref<8x1xf32, #tpu.memory_space<vmem>>, vector<8x1xf32>,
    return
  }
  func.func @transform_0(%arg0: i32) -> (i32, i32) {
    %c0_i32 = arith.constant 0 : i32
    %c0_i32_0 = arith.constant 0 : i32
    return %arg0, %c0_i32 : i32, i32
  }
  func.func @transform_1(%arg0: i32) -> (i32, i32) {
    %c0_i32 = arith.constant 0 : i32
    %c0_i32_0 = arith.constant 0 : i32
    %c0_i32_1 = arith.constant 0 : i32
    return %c0_i32, %c0_i32_0 : i32, i32
  }
  func.func @transform_2(%arg0: i32) -> (i32, i32) {
    %c0_i32 = arith.constant 0 : i32
    %c0_i32_0 = arith.constant 0 : i32
    %c0_i32_1 = arith.constant 0 : i32
    return %c0_i32, %c0_i32_0 : i32, i32
  }
  func.func @transform_3(%arg0: i32) -> (i32, i32) {
    %c0_i32 = arith.constant 0 : i32
    %c0_i32_0 = arith.constant 0 : i32
    %c0_i32_1 = arith.constant 0 : i32
    return %c0_i32, %c0_i32_0 : i32, i32
  }
  func.func @transform_4(%arg0: i32) -> (i32, i32) {
    %c0_i32 = arith.constant 0 : i32
    %c0_i32_0 = arith.constant 0 : i32
    %c0_i32_1 = arith.constant 0 : i32
    return %c0_i32, %c0_i32_0 : i32, i32
  }
  func.func @transform_5(%arg0: i32) -> (i32, i32) {
    %c0_i32 = arith.constant 0 : i32
    %c0_i32_0 = arith.constant 0 : i32
    %c0_i32_1 = arith.constant 0 : i32
    return %c0_i32, %c0_i32_0 : i32, i32
  }
  func.func @transform_6(%arg0: i32) -> (i32, i32) {
    %c0_i32 = arith.constant 0 : i32
    %c0_i32_0 = arith.constant 0 : i32
    %c0_i32_1 = arith.constant 0 : i32
    return %c0_i32, %c0_i32_0 : i32, i32
  }
  func.func @transform_7(%arg0: i32) -> (i32, i32) {
    %c0_i32 = arith.constant 0 : i32
    %c0_i32_0 = arith.constant 0 : i32
    return %arg0, %c0_i32 : i32, i32
  }
}

</mosaic_0001>

<bundles_post_ra>
// kernel: tpu_custom_call.1
= control target key start
LH: loop header
LB: loop body
LE: loop exit
PB: predicated region body
PF: predicated region fallthrough
CT: control target
= control target key end

     0   :  { %v240_v0 = vmov 0.0   ;;  %vm241_vm0 = vmmov 0   ;;  %vm54_vm1 = vcmask 261120   ;;  %vm119_vm2 = vcmask 523264   ;;  %s332_s1 = inlined_call_operand.vmem [shape: bf16[32,64], index: 1, kind: input, shape index: {}]   ;;  %s333_s0 = inlined_call_operand.vmem [shape: f32[8,32], index: 0, kind: input, shape index: {}]   ;;  %s334_s3 = inlined_call_operand.vmem [shape: f32[64,32], index: 3, kind: input, shape index: {}]   ;;  %s335_s2 = inlined_call_operand.vmem [shape: f32[1,64], index: 2, kind: input, shape index: {}]   ;;  %s336_s6 = inlined_call_operand.<no memory space> [shape: f32[1,1], index: 6, kind: input, shape index: {}]   ;;  %s337_s4 = inlined_call_operand.vmem [shape: f32[1,32], index: 4, kind: input, shape index: {}]   ;;  %s338_s5 = inlined_call_operand.vmem [shape: f32[1,32], index: 5, kind: input, shape index: {}]   ;;  %s339_s7 = inlined_call_operand.vmem [shape: f32[8,1], index: 7, kind: output, shape index: {}]  }
   0x1   :  { %212 = vmatprep.subr.bf16.mxu0 %v240_v0  ;;  %v234_v1 = vld [vmem:[%s332_s1] sm:$0xff]   ;;  %216 = vmatprep.mubr.msk.bf16.mxu0 %vm241_vm0, %v240_v0  ;;  %v235_v2 = vld [vmem:[%s332_s1 + $0x8] sm:$0xff]   ;;  %v102_v7 = vld [vmem:[%s334_s3 + $0x10] sm:$0xff]  ;;  %v12_v25 = vstv %s336_s6  ;;  %vm189_vm3 = vcmask 7168  }
   0x2   :  { %220 = vmatprep.subr.bf16.mxu1 %v240_v0  ;;  %228 = vmatprep.mubr.msk.bf16.mxu1 %vm241_vm0, %v240_v0  ;;  %v29_v3 = vld [vmem:[%s333_s0] sm:$0xff]  ;;  %v101_v5 = vld [vmem:[%s334_s3 + $0x8] sm:$0xff]  ;;  %v103_v8 = vld [vmem:[%s334_s3 + $0x18] sm:$0xff]  ;;  %13 = vst [vmem:[#allocation2] sm:$0x1] %v12_v25 }
   0x3   :  { %213 = vmatpush3.bf16.msra.mxu0 %v234_v1  ;;  %v100_v4 = vld [vmem:[%s334_s3] sm:$0xff]  ;;  %v30_v9 = vpack.c.bf16 %v29_v3, %v29_v3  ;;  %v109_v10 = vpack.c.bf16 %v103_v8, %v102_v7  ;;  %v105_v12 = vld [vmem:[%s334_s3 + $0x28] sm:$0xff]  ;;  %v106_v14 = vld [vmem:[%s334_s3 + $0x30] sm:$0xff] }
   0x4   :  { %214 = vmatprep.subr.bf16.mxu0 %v240_v0  ;;  %v108_v6 = vpack.c.bf16 %v101_v5, %v100_v4  ;;  %v104_v11 = vld [vmem:[%s334_s3 + $0x20] sm:$0xff]  ;;  %v107_v15 = vld [vmem:[%s334_s3 + $0x38] sm:$0xff] }
   0x5   :  { %v110_v13 = vpack.c.bf16 %v105_v12, %v104_v11  ;;  %v111_v16 = vpack.c.bf16 %v107_v15, %v106_v14  ;;  %v195_v17 = vld [vmem:[%s335_s2] ss:$0 sm:$0xff] }
   0x6   :  { %221 = vmatpush3.bf16.msra.mxu1 %v108_v6  ;;  %v199_v26 = vld [vmem:[%s337_s4] ss:$0 sm:$0xff] }
   0x7   :  { %215 = vmatpush3.bf16.msra.mxu0 %v235_v2  ;;  %222 = vmatprep.subr.bf16.mxu1 %v240_v0  ;;  %v201_v31 = vld [vmem:[%s338_s5] ss:$0 sm:$0xff] }
   0x9   :  { %v202_v36 = vld [vmem:[#allocation2] ss:$0 sm:$0xff] }
   0xa   :  { %217 = vmatmul.mubr.msk.bf16.vlgmr.msra.gmra.mrb[0].mxu0 %vm54_vm1, %v30_v9  ;;  %223 = vmatpush3.bf16.msra.mxu1 %v109_v10 }
   0xb   :  { %224 = vmatprep.subr.bf16.mxu1 %v240_v0 }
   0xe   :  { %225 = vmatpush3.bf16.msra.mxu1 %v110_v13 }
   0xf   :  { %226 = vmatprep.subr.bf16.mxu1 %v240_v0 }
  0x12   :  { %227 = vmatpush3.bf16.msra.mxu1 %v111_v16 }
  0xdd   :  { %v92_v18 = vpop.f32.mrb[0].mxu0 }
  0xde   :  { %v93_v19 = vadd.f32 %v195_v17, %v92_v18  ;;  %v218_v20 = vpop.f32.mrb[1].mxu0 }
  0xdf   :  { %v95_v21 = vpop.f32.mrb[2].mxu0 }
  0xe0   :  { %v98_v22 = vmax.f32 %v93_v19, 0.0  ;;  %v219_v23 = vpop.f32.mrb[3].mxu0 }
  0xe2   :  { %v99_v24 = vpack.c.bf16 %v98_v22, %v98_v22 }
  0xe4   :  { %229 = vmatmul.mubr.msk.bf16.vlgmr.msra.gmra.mrb[0].mxu1 %vm119_vm2, %v99_v24 }
 0x1b7   :  { %v157_v27 = vpop.f32.mrb[0].mxu1 }
 0x1b8   :  { %v158_v28 = vadd.f32 %v199_v26, %v157_v27  ;;  %v230_v29 = vpop.f32.mrb[1].mxu1 }
 0x1b9   :  { %v160_v30 = vpop.f32.mrb[2].mxu1 }
 0x1ba   :  { %v163_v32 = vmax.f32 %v158_v28, 0.0  ;;  %v231_v33 = vpop.f32.mrb[3].mxu1 }
 0x1bc   :  { %v171_v34 = vmul.f32 %v201_v31, %v163_v32 }
 0x1be   :  { %v172_v35 = vsel %vm54_vm1, %v171_v34, 0.0 }
 0x1bf   :  { %173 = vadd.xlane.f32.xlu0 %v172_v35 }
 0x24c   :  { %v174_v37 = vpop.xlane.xlu0 %173 }
 0x24d   :  { %v182_v38 = vadd.f32 %v202_v36, %v174_v37 }
 0x24f   :  { %v203_v39 = vmul.f32 -1.442695, %v182_v38 }
 0x251   :  { %236 = vpow2.f32 %v203_v39 }
 0x25b   :  { %v237_v40 = vpop.eup %236 }
 0x25c   :  { %v186_v41 = vadd.f32 1.0, %v237_v40 }
 0x25e   :  { %238 = vrcp.f32 %v186_v41 }
 0x268   :  { %v239_v42 = vpop.eup %238 }
 0x269   :  { %190 = vst.msk [vmem:[%s339_s7] sm:$0xff] %vm189_vm3, %v239_v42 }

</bundles_post_ra>
